<compile_context>
chip_gen: v6e
topology: v6e:2x2x1
jax: 0.10.0
libtpu: 0.0.40
codegen_flags: <defaults>
</compile_context>

<pallas_src>
import jax
import jax.numpy as jnp
from jax.experimental import pallas as pl
from jax.experimental.pallas import tpu as pltpu


_LANES = 128        # TPU lane width; output rows are fully lane-dense.
_BLOCK_ROWS = 512   # rows per grid step at large batch: 512*128*4 B = 256 KiB.

# Acklam inverse-normal-CDF rational-approximation coefficients
# (denominator tuples include the trailing +1 constant).
_A = (-3.969683028665376e+01,  2.209460984245205e+02, -2.759285104469687e+02,
       1.383577518672690e+02, -3.066479806614716e+01,  2.506628277459239e+00)
_B = (-5.447609879822406e+01,  1.615858368580409e+02, -1.556989798598866e+02,
       6.680131188771972e+01, -1.328068155288572e+01,  1.0)
_C = (-7.784894002430293e-03, -3.223964580411365e-01, -2.400758277161838e+00,
      -2.549732539343734e+00,  4.374664141464968e+00,  2.938163982698783e+00)
_D = ( 7.784695709041462e-03,  3.224671290700398e-01,  2.445134137142996e+00,
       3.754408661907416e+00,  1.0)
_P_LOW = 0.02425


def _poly(coeffs, x):
    """Horner evaluation in f32 (VPU mul/add chain)."""
    acc = jnp.float32(coeffs[0])
    for c in coeffs[1:]:
        acc = acc * x + jnp.float32(c)
    return acc


def _norm_inv_cdf(p):
    """Standard-normal inverse CDF (Acklam approximation), branchless.

    f32 evaluation has ~1e-2 worst-case relative error right at the
    central/tail branch boundary (|z| ~ 1.97); immaterial for random test
    features.  Only ONE division per element (numerator/denominator are
    selected before dividing).
    """
    # Central region: p in [P_LOW, 1 - P_LOW].
    q = p - 0.5
    r = q * q
    num_c = _poly(_A, r) * q
    den_c = _poly(_B, r)

    # Tails (symmetric): evaluate with the tail probability min(p, 1-p).
    pt = jnp.minimum(p, 1.0 - p)                 # always > 0 by construction
    qt = jnp.sqrt(-2.0 * jnp.log(pt))
    num_t = _poly(_C, qt)                        # negative (lower-tail value)
    den_t = _poly(_D, qt)
    num_t = jnp.where(p < 0.5, num_t, -num_t)    # mirror for upper tail

    in_tail = jnp.logical_or(p < _P_LOW, p > 1.0 - _P_LOW)
    num = jnp.where(in_tail, num_t, num_c)
    den = jnp.where(in_tail, den_t, den_c)
    return num / den                             # single f32 divide


def _mix32(x):
    """lowbias32 integer finalizer — xor/shift/mul only (VPU-friendly)."""
    x = x ^ (x >> jnp.uint32(16))
    x = x * jnp.uint32(0x7FEB352D)
    x = x ^ (x >> jnp.uint32(15))
    x = x * jnp.uint32(0x846CA68B)
    x = x ^ (x >> jnp.uint32(16))
    return x


def _random_features_kernel(seed_ref, o_ref):
    """Fill one lane-dense (block_rows, 128) output block with i.i.d. N(0,1)."""
    block_rows, lanes = o_ref.shape

    # Counter-based PRNG: hash of the *global* element index, so every grid
    # step / TensorCore produces an independent, reproducible sub-stream.
    row0 = pl.program_id(0) * block_rows
    r = jax.lax.broadcasted_iota(jnp.int32, (block_rows, lanes), 0)
    c = jax.lax.broadcasted_iota(jnp.int32, (block_rows, lanes), 1)
    idx = ((row0 + r) * lanes + c).astype(jnp.uint32)

    seed = seed_ref[0].astype(jnp.uint32)
    bits = idx ^ (seed * jnp.uint32(0x9E3779B9))
    bits = _mix32(bits)
    bits = _mix32(bits + seed)

    # Low 23 bits -> uniform strictly inside (0, 1): p = (k + 0.5) * 2^-23,
    # so log(p) and log(1-p) are always finite.
    k = (bits & jnp.uint32(0x007FFFFF)).astype(jnp.int32)
    p = (k.astype(jnp.float32) + 0.5) * jnp.float32(2.0 ** -23)

    o_ref[...] = _norm_inv_cdf(p).astype(o_ref.dtype)


def _round_up(n, m):
    return ((n + m - 1) // m) * m


def random_extractor_forward(x, seed, *, n_features=32):
    """RandomExtractor.forward: random N(0,1) features of shape (B, n_features).

    Only x.shape[0] (the batch size) is consumed, matching the reference module.
    """
    batch = x.shape[0]
    total = batch * n_features

    # Flat-pack the useful elements into fully lane-dense 128-wide rows.
    rows = max(1, -(-total // _LANES))
    if rows <= _BLOCK_ROWS:
        block_rows = _round_up(rows, 8)     # one block: effectively gridless
        n_blocks = 1
    else:
        block_rows = _BLOCK_ROWS            # 512 x 128 x f32 = 256 KiB / block
        n_blocks = -(-rows // _BLOCK_ROWS)
    row_pad = block_rows * n_blocks

    seed_arr = jnp.asarray(seed, dtype=jnp.int32).reshape((1,))

    cost = pl.CostEstimate(
        flops=60 * row_pad * _LANES,            # hash + polynomial + selects
        transcendentals=3 * row_pad * _LANES,   # log + sqrt + divide
        bytes_accessed=4 * row_pad * _LANES + 4,
    )

    padded = pl.pallas_call(
        _random_features_kernel,
        out_shape=jax.ShapeDtypeStruct((row_pad, _LANES), jnp.float32),
        grid=(n_blocks,),
        in_specs=[pl.BlockSpec(memory_space=pltpu.MemorySpace.SMEM)],
        out_specs=pl.BlockSpec((block_rows, _LANES), lambda i: (i, 0)),
        compiler_params=pltpu.CompilerParams(
            dimension_semantics=("parallel",),
        ),
        cost_estimate=cost,
    )(seed_arr)

    # Contiguous reshape (not a strided slice) back to the module's (B, 32).
    return padded.reshape(-1)[:total].reshape(batch, n_features)


def random_extractor_transform(x):
    """RandomExtractor.transform is the identity; no kernel needed."""
    return x


if __name__ == "__main__":
    # Small shapes consistent with the module's (batch, 3, H, W) contract.
    B, C, H, W = 2, 3, 16, 16
    N_FEATURES = 32

    key = jax.random.PRNGKey(0)
    kx, ks = jax.random.split(key)

    x = jax.random.uniform(kx, (B, C, H, W), dtype=jnp.float32)
    seed = jax.random.randint(ks, (), 0, 2 ** 31 - 1, dtype=jnp.int32)

    xt = random_extractor_transform(x)
    assert xt.shape == x.shape

    feats = jax.block_until_ready(
        random_extractor_forward(xt, seed, n_features=N_FEATURES))

    # Contract / sanity checks: shape, dtype, finiteness, roughly standard
    # normal moments, and determinism for a fixed seed.
    assert feats.shape == (B, N_FEATURES), feats.shape
    assert feats.dtype == jnp.float32, feats.dtype
    assert bool(jnp.all(jnp.isfinite(feats)))
    mean = float(jnp.mean(feats))
    std = float(jnp.std(feats))
    assert abs(mean) < 1.0, mean
    assert 0.3 < std < 3.0, std

    feats2 = jax.block_until_ready(
        random_extractor_forward(xt, seed, n_features=N_FEATURES))
    assert bool(jnp.array_equal(feats, feats2))

    # Exercise the multi-block, row-parallel grid path with a larger batch.
    big_x = jnp.zeros((4096, C, 1, 1), dtype=jnp.float32)
    big = jax.block_until_ready(
        random_extractor_forward(big_x, seed, n_features=N_FEATURES))
    assert big.shape == (4096, N_FEATURES), big.shape
    assert bool(jnp.all(jnp.isfinite(big)))
    big_mean = float(jnp.mean(big))
    big_std = float(jnp.std(big))
    assert abs(big_mean) < 0.1, big_mean
    assert 0.8 < big_std < 1.2, big_std

    print("KERNEL_OK")
</pallas_src>

<mosaic_0001>
module attributes {stable_mosaic.version = 11 : i64} {
  func.func @_random_features_kernel(%arg0: i32, %arg1: memref<1xi32, #tpu.memory_space<smem>>, %arg2: memref<8x128xf32, #tpu.memory_space<vmem>>) attributes {dimension_semantics = [#tpu.dimension_semantics<parallel>], iteration_bounds = array<i64: 1>, scalar_prefetch = 0 : i64, scratch_operands = 0 : i64, tpu.core_type = #tpu.core_type<tc>, window_params = [{transform_indices = @transform_0, window_bounds = array<i64: 1>}, {transform_indices = @transform_1, window_bounds = array<i64: 8, 128>}]} {
    %c8_i32 = arith.constant 8 : i32
    %0 = arith.muli %arg0, %c8_i32 : i32
    %1 = tpu.iota {dimensions = array<i32: 0>} : vector<8x128xi32>
    %2 = tpu.iota {dimensions = array<i32: 1>} : vector<8x128xi32>
    %3 = vector.broadcast %0 : i32 to vector<8x128xi32>
    %4 = arith.addi %3, %1 : vector<8x128xi32>
    %c128_i32 = arith.constant 128 : i32
    %5 = vector.broadcast %c128_i32 : i32 to vector<8x128xi32>
    %6 = arith.muli %4, %5 : vector<8x128xi32>
    %7 = arith.addi %6, %2 : vector<8x128xi32>
    %c0 = arith.constant 0 : index
    %8 = memref.load %arg1[%c0] : memref<1xi32, #tpu.memory_space<smem>>
    %c-1640531527_i32 = arith.constant -1640531527 : i32
    %9 = arith.muli %8, %c-1640531527_i32 : i32
    %10 = vector.broadcast %9 : i32 to vector<8x128xi32>
    %11 = arith.xori %7, %10 : vector<8x128xi32>
    %c16_i32 = arith.constant 16 : i32
    %12 = vector.broadcast %c16_i32 : i32 to vector<8x128xi32>
    %13 = arith.shrui %11, %12 : vector<8x128xi32>
    %14 = arith.xori %11, %13 : vector<8x128xi32>
    %c2146121005_i32 = arith.constant 2146121005 : i32
    %15 = vector.broadcast %c2146121005_i32 : i32 to vector<8x128xi32>
    %16 = arith.muli %14, %15 : vector<8x128xi32>
    %c15_i32 = arith.constant 15 : i32
    %17 = vector.broadcast %c15_i32 : i32 to vector<8x128xi32>
    %18 = arith.shrui %16, %17 : vector<8x128xi32>
    %19 = arith.xori %16, %18 : vector<8x128xi32>
    %c-2073254261_i32 = arith.constant -2073254261 : i32
    %20 = vector.broadcast %c-2073254261_i32 : i32 to vector<8x128xi32>
    %21 = arith.muli %19, %20 : vector<8x128xi32>
    %c16_i32_0 = arith.constant 16 : i32
    %22 = vector.broadcast %c16_i32_0 : i32 to vector<8x128xi32>
    %23 = arith.shrui %21, %22 : vector<8x128xi32>
    %24 = arith.xori %21, %23 : vector<8x128xi32>
    %25 = vector.broadcast %8 : i32 to vector<8x128xi32>
    %26 = arith.addi %24, %25 : vector<8x128xi32>
    %c16_i32_1 = arith.constant 16 : i32
    %27 = vector.broadcast %c16_i32_1 : i32 to vector<8x128xi32>
    %28 = arith.shrui %26, %27 : vector<8x128xi32>
    %29 = arith.xori %26, %28 : vector<8x128xi32>
    %c2146121005_i32_2 = arith.constant 2146121005 : i32
    %30 = vector.broadcast %c2146121005_i32_2 : i32 to vector<8x128xi32>
    %31 = arith.muli %29, %30 : vector<8x128xi32>
    %c15_i32_3 = arith.constant 15 : i32
    %32 = vector.broadcast %c15_i32_3 : i32 to vector<8x128xi32>
    %33 = arith.shrui %31, %32 : vector<8x128xi32>
    %34 = arith.xori %31, %33 : vector<8x128xi32>
    %c-2073254261_i32_4 = arith.constant -2073254261 : i32
    %35 = vector.broadcast %c-2073254261_i32_4 : i32 to vector<8x128xi32>
    %36 = arith.muli %34, %35 : vector<8x128xi32>
    %c16_i32_5 = arith.constant 16 : i32
    %37 = vector.broadcast %c16_i32_5 : i32 to vector<8x128xi32>
    %38 = arith.shrui %36, %37 : vector<8x128xi32>
    %39 = arith.xori %36, %38 : vector<8x128xi32>
    %c8388607_i32 = arith.constant 8388607 : i32
    %40 = vector.broadcast %c8388607_i32 : i32 to vector<8x128xi32>
    %41 = arith.andi %39, %40 : vector<8x128xi32>
    %42 = arith.sitofp %41 : vector<8x128xi32> to vector<8x128xf32>
    %cst = arith.constant 5.000000e-01 : f32
    %43 = vector.broadcast %cst : f32 to vector<8x128xf32>
    %44 = arith.addf %42, %43 : vector<8x128xf32>
    %cst_6 = arith.constant 1.1920929E-7 : f32
    %45 = vector.broadcast %cst_6 : f32 to vector<8x128xf32>
    %46 = arith.mulf %44, %45 : vector<8x128xf32>
    %cst_7 = arith.constant 5.000000e-01 : f32
    %47 = vector.broadcast %cst_7 : f32 to vector<8x128xf32>
    %48 = arith.subf %46, %47 : vector<8x128xf32>
    %49 = arith.mulf %48, %48 : vector<8x128xf32>
    %cst_8 = arith.constant -39.6968307 : f32
    %50 = vector.broadcast %cst_8 : f32 to vector<8x128xf32>
    %51 = arith.mulf %50, %49 : vector<8x128xf32>
    %cst_9 = arith.constant 220.946106 : f32
    %52 = vector.broadcast %cst_9 : f32 to vector<8x128xf32>
    %53 = arith.addf %51, %52 : vector<8x128xf32>
    %54 = arith.mulf %53, %49 : vector<8x128xf32>
    %cst_10 = arith.constant -275.928497 : f32
    %55 = vector.broadcast %cst_10 : f32 to vector<8x128xf32>
    %56 = arith.addf %54, %55 : vector<8x128xf32>
    %57 = arith.mulf %56, %49 : vector<8x128xf32>
    %cst_11 = arith.constant 138.357758 : f32
    %58 = vector.broadcast %cst_11 : f32 to vector<8x128xf32>
    %59 = arith.addf %57, %58 : vector<8x128xf32>
    %60 = arith.mulf %59, %49 : vector<8x128xf32>
    %cst_12 = arith.constant -30.6647987 : f32
    %61 = vector.broadcast %cst_12 : f32 to vector<8x128xf32>
    %62 = arith.addf %60, %61 : vector<8x128xf32>
    %63 = arith.mulf %62, %49 : vector<8x128xf32>
    %cst_13 = arith.constant 2.50662827 : f32
    %64 = vector.broadcast %cst_13 : f32 to vector<8x128xf32>
    %65 = arith.addf %63, %64 : vector<8x128xf32>
    %66 = arith.mulf %65, %48 : vector<8x128xf32>
    %cst_14 = arith.constant -54.4760971 : f32
    %67 = vector.broadcast %cst_14 : f32 to vector<8x128xf32>
    %68 = arith.mulf %67, %49 : vector<8x128xf32>
    %cst_15 = arith.constant 161.585831 : f32
    %69 = vector.broadcast %cst_15 : f32 to vector<8x128xf32>
    %70 = arith.addf %68, %69 : vector<8x128xf32>
    %71 = arith.mulf %70, %49 : vector<8x128xf32>
    %cst_16 = arith.constant -155.698975 : f32
    %72 = vector.broadcast %cst_16 : f32 to vector<8x128xf32>
    %73 = arith.addf %71, %72 : vector<8x128xf32>
    %74 = arith.mulf %73, %49 : vector<8x128xf32>
    %cst_17 = arith.constant 66.8013153 : f32
    %75 = vector.broadcast %cst_17 : f32 to vector<8x128xf32>
    %76 = arith.addf %74, %75 : vector<8x128xf32>
    %77 = arith.mulf %76, %49 : vector<8x128xf32>
    %cst_18 = arith.constant -13.2806816 : f32
    %78 = vector.broadcast %cst_18 : f32 to vector<8x128xf32>
    %79 = arith.addf %77, %78 : vector<8x128xf32>
    %80 = arith.mulf %79, %49 : vector<8x128xf32>
    %cst_19 = arith.constant 1.000000e+00 : f32
    %81 = vector.broadcast %cst_19 : f32 to vector<8x128xf32>
    %82 = arith.addf %80, %81 : vector<8x128xf32>
    %cst_20 = arith.constant 1.000000e+00 : f32
    %83 = vector.broadcast %cst_20 : f32 to vector<8x128xf32>
    %84 = arith.subf %83, %46 : vector<8x128xf32>
    %85 = arith.minimumf %46, %84 : vector<8x128xf32>
    %86 = math.log %85 : vector<8x128xf32>
    %cst_21 = arith.constant -2.000000e+00 : f32
    %87 = vector.broadcast %cst_21 : f32 to vector<8x128xf32>
    %88 = arith.mulf %87, %86 : vector<8x128xf32>
    %89 = math.sqrt %88 : vector<8x128xf32>
    %cst_22 = arith.constant -0.0077848942 : f32
    %90 = vector.broadcast %cst_22 : f32 to vector<8x128xf32>
    %91 = arith.mulf %90, %89 : vector<8x128xf32>
    %cst_23 = arith.constant -0.322396457 : f32
    %92 = vector.broadcast %cst_23 : f32 to vector<8x128xf32>
    %93 = arith.addf %91, %92 : vector<8x128xf32>
    %94 = arith.mulf %93, %89 : vector<8x128xf32>
    %cst_24 = arith.constant -2.40075827 : f32
    %95 = vector.broadcast %cst_24 : f32 to vector<8x128xf32>
    %96 = arith.addf %94, %95 : vector<8x128xf32>
    %97 = arith.mulf %96, %89 : vector<8x128xf32>
    %cst_25 = arith.constant -2.54973245 : f32
    %98 = vector.broadcast %cst_25 : f32 to vector<8x128xf32>
    %99 = arith.addf %97, %98 : vector<8x128xf32>
    %100 = arith.mulf %99, %89 : vector<8x128xf32>
    %cst_26 = arith.constant 4.37466431 : f32
    %101 = vector.broadcast %cst_26 : f32 to vector<8x128xf32>
    %102 = arith.addf %100, %101 : vector<8x128xf32>
    %103 = arith.mulf %102, %89 : vector<8x128xf32>
    %cst_27 = arith.constant 2.938164 : f32
    %104 = vector.broadcast %cst_27 : f32 to vector<8x128xf32>
    %105 = arith.addf %103, %104 : vector<8x128xf32>
    %cst_28 = arith.constant 0.00778469583 : f32
    %106 = vector.broadcast %cst_28 : f32 to vector<8x128xf32>
    %107 = arith.mulf %106, %89 : vector<8x128xf32>
    %cst_29 = arith.constant 0.322467119 : f32
    %108 = vector.broadcast %cst_29 : f32 to vector<8x128xf32>
    %109 = arith.addf %107, %108 : vector<8x128xf32>
    %110 = arith.mulf %109, %89 : vector<8x128xf32>
    %cst_30 = arith.constant 2.44513416 : f32
    %111 = vector.broadcast %cst_30 : f32 to vector<8x128xf32>
    %112 = arith.addf %110, %111 : vector<8x128xf32>
    %113 = arith.mulf %112, %89 : vector<8x128xf32>
    %cst_31 = arith.constant 3.7544086 : f32
    %114 = vector.broadcast %cst_31 : f32 to vector<8x128xf32>
    %115 = arith.addf %113, %114 : vector<8x128xf32>
    %116 = arith.mulf %115, %89 : vector<8x128xf32>
    %cst_32 = arith.constant 1.000000e+00 : f32
    %117 = vector.broadcast %cst_32 : f32 to vector<8x128xf32>
    %118 = arith.addf %116, %117 : vector<8x128xf32>
    %cst_33 = arith.constant 5.000000e-01 : f32
    %119 = vector.broadcast %cst_33 : f32 to vector<8x128xf32>
    %120 = arith.cmpf olt, %46, %119 : vector<8x128xf32>
    %cst_34 = arith.constant 0.000000e+00 : f32
    %121 = vector.broadcast %cst_34 : f32 to vector<8x128xf32>
    %122 = arith.subf %121, %105 : vector<8x128xf32>
    %123 = arith.select %120, %105, %122 : vector<8x128xi1>, vector<8x128xf32>
    %cst_35 = arith.constant 2.425000e-02 : f32
    %124 = vector.broadcast %cst_35 : f32 to vector<8x128xf32>
    %125 = arith.cmpf olt, %46, %124 : vector<8x128xf32>
    %cst_36 = arith.constant 9.757500e-01 : f32
    %126 = vector.broadcast %cst_36 : f32 to vector<8x128xf32>
    %127 = arith.cmpf ogt, %46, %126 : vector<8x128xf32>
    %128 = arith.ori %125, %127 : vector<8x128xi1>
    %129 = arith.select %128, %123, %66 : vector<8x128xi1>, vector<8x128xf32>
    %130 = arith.select %128, %118, %82 : vector<8x128xi1>, vector<8x128xf32>
    %131 = arith.divf %129, %130 : vector<8x128xf32>
    %c0_37 = arith.constant 0 : index
    %c0_38 = arith.constant 0 : index
    %132 = vector.load %arg2[%c0_37, %c0_38] : memref<8x128xf32, #tpu.memory_space<vmem>>, vector<8x128xf32>
    tpu.vector_store %arg2[%c0_37, %c0_38], %131 {strides = array<i32>} : memref<8x128xf32, #tpu.memory_space<vmem>>, vector<8x128xf32>,
    return
  }
  func.func @transform_0(%arg0: i32) -> i32 {
    %c0_i32 = arith.constant 0 : i32
    %c0_i32_0 = arith.constant 0 : i32
    return %c0_i32 : i32
  }
  func.func @transform_1(%arg0: i32) -> (i32, i32) {
    %c0_i32 = arith.constant 0 : i32
    %c0_i32_0 = arith.constant 0 : i32
    return %arg0, %c0_i32 : i32, i32
  }
}

</mosaic_0001>

<bundles_post_ra>
// kernel: tpu_custom_call.1
= control target key start
LH: loop header
LB: loop body
LE: loop exit
PB: predicated region body
PF: predicated region fallthrough
CT: control target
= control target key end

     0   :  { %v11_v0 = vlaneseq  ;;  %s189_s0 = inlined_call_operand.<no memory space> [shape: s32[1], index: 0, kind: input, shape index: {}]   ;;  %s190_s1 = inlined_call_operand.hbm [shape: f32[8,128], index: 1, kind: output, shape index: {}]  }
   0x1   :  { %7 = vsyncpa [#allocation4], 0  ;;  %s20_s8 = smul.u32 2654435769, %s189_s0  ;;  %v31_v14 = vstv %s189_s0  ;;  %s153_s0 = smov [#allocation3]  }
   0x2   :  { %v12_v1 = vshrl.u32 %v11_v0, 7  ;;  %v14_v2 = vand.u32 127, %v11_v0  ;;  %s115_s11 = sshll.u32 %s153_s0, 4  ;;  %s116_s11 = int_to_ptr.vmem [resolvable:$true] %s115_s11 }
   0x3   :  { %v21_v4 = vstv %s20_s8  ;;  %s131_s12 = scalar_lea.vmem %s116_s11, 128  ;;  %p136_p1 = scmp.lt.s32.totalorder %s116_s11, %s116_s11 }
   0x4   :  { %v17_v3 = vmul.u32 128, %v12_v1  ;;  %p132_p0 = scmp.ne.s32.totalorder %s116_s11, %s131_s12  ;;  %p137_p2 = scmp.lt.s32.totalorder %s131_s12, %s131_s12 }
   0x6   :  { %v18_v5 = vadd.s32 %v17_v3, %v14_v2  ;;  %p138_p3 = por %p137_p2, %p136_p1 }
   0x8   :  { %v22_v6 = vxor.u32 %v21_v4, %v18_v5  ;;  %p139_p4 = pnand %p138_p3, %p132_p0 }
   0xa   :  { %v23_v7 = vshrl.u32 %v22_v6, 16 }
   0xc   :  { %v24_v8 = vxor.u32 %v23_v7, %v22_v6 }
   0xe   :  { %v25_v9 = vmul.u32 2146121005, %v24_v8 }
  0x10   :  { %v26_v10 = vshrl.u32 %v25_v9, 15 }
  0x12   :  { %v27_v11 = vxor.u32 %v26_v10, %v25_v9 }
  0x14   :  { %v28_v12 = vmul.u32 2221713035, %v27_v11 }
  0x16   :  { %v29_v13 = vshrl.u32 %v28_v12, 16 }
  0x18   :  { %v30_v15 = vxor.u32 %v29_v13, %v28_v12 }
  0x1a   :  { %v32_v16 = vadd.s32 %v31_v14, %v30_v15 }
  0x1c   :  { %v33_v17 = vshrl.u32 %v32_v16, 16 }
  0x1e   :  { %v34_v18 = vxor.u32 %v33_v17, %v32_v16 }
  0x20   :  { %v35_v19 = vmul.u32 2146121005, %v34_v18 }
  0x22   :  { %v36_v20 = vshrl.u32 %v35_v19, 15 }
  0x24   :  { %v37_v21 = vxor.u32 %v36_v20, %v35_v19 }
  0x26   :  { %v38_v22 = vmul.u32 2221713035, %v37_v21 }
  0x28   :  { %v39_v23 = vshrl.u32 %v38_v22, 16 }
  0x2a   :  { %v40_v24 = vxor.u32 %v39_v23, %v38_v22 }
  0x2c   :  { %v41_v25 = vand.u32 8388607, %v40_v24 }
  0x2e   :  { %v42_v26 = vcvt.s32.f32 %v41_v25 }
  0x30   :  { %v43_v27 = vadd.f32 0.5, %v42_v26 }
  0x32   :  { %v170_v28 = vmul.f32 1.1920929e-07, %v43_v27 }
  0x34   :  { %v68_v29 = vsub.f32 1.0, %v170_v28  ;;  %v123_v31 = vadd.f32 -0.5, %v170_v28  ;;  %vm101_vm2 = vcmp.lt.f32.partialorder %v170_v28, 0.02425  ;;  %vm102_vm3 = vcmp.gt.f32.partialorder %v170_v28, 0.97575 }
  0x35   :  { %vm177_vm4 = vmor %vm101_vm2, %vm102_vm3  ;;  %vm98_vm5 = vcmp.lt.f32.partialorder %v170_v28, 0.5 }
  0x36   :  { %v69_v30 = vmin.f32 %v170_v28, %v68_v29  ;;  %v46_v32 = vmul.f32 %v123_v31, %v123_v31 }
  0x38   :  { %125 = vlog2.f32 %v69_v30  ;;  %v58_v33 = vmul.f32 -54.476097, %v46_v32  ;;  %v47_v38 = vmul.f32 -39.69683, %v46_v32 }
  0x3a   :  { %v59_v36 = vadd.f32 161.58583, %v58_v33  ;;  %v48_v40 = vadd.f32 220.9461, %v47_v38 }
  0x3c   :  { %v60_v39 = vmul.f32 %v59_v36, %v46_v32  ;;  %v49_v42 = vmul.f32 %v48_v40, %v46_v32 }
  0x3e   :  { %v61_v41 = vadd.f32 -155.69897, %v60_v39  ;;  %v50_v46 = vadd.f32 -275.9285, %v49_v42 }
  0x40   :  { %v62_v43 = vmul.f32 %v61_v41, %v46_v32  ;;  %v51_v51 = vmul.f32 %v50_v46, %v46_v32 }
  0x42   :  { %v63_v47 = vadd.f32 66.801315, %v62_v43  ;;  %v52_v57 = vadd.f32 138.35776, %v51_v51 }
  0x44   :  { %v64_v52 = vmul.f32 %v63_v47, %v46_v32  ;;  %v53_v63 = vmul.f32 %v52_v57, %v46_v32 }
  0x45   :  { %v126_v34 = vpop.eup %125 }
  0x46   :  { %v71_v35 = vmul.f32 0.6931472, %v126_v34  ;;  %v65_v58 = vadd.f32 -13.280682, %v64_v52  ;;  %v54_v5 = vadd.f32 -30.664799, %v53_v63 }
  0x48   :  { %v72_v37 = vmul.f32 -2.0, %v71_v35  ;;  %v66_v0 = vmul.f32 %v65_v58, %v46_v32  ;;  %v55_v12 = vmul.f32 %v54_v5, %v46_v32 }
  0x4a   :  { %127 = vrsqrt.f32 %v72_v37  ;;  %vm75_vm0 = vcmp.eq.f32.partialorder %v72_v37, inf  ;;  %v78_v45 = vand.u32 2147483648, %v72_v37  ;;  %vm77_vm1 = vcmp.eq.f32.partialorder %v72_v37, 0.0 }
  0x4b   :  { %v67_v6 = vadd.f32 1.0, %v66_v0  ;;  %v56_v16 = vadd.f32 2.5066283, %v55_v12 }
  0x4d   :  { %v57_v18 = vmul.f32 %v123_v31, %v56_v16 }
  0x57   :  { %v128_v44 = vpop.eup %127 }
  0x58   :  { %v74_v48 = vmul.f32 %v128_v44, %v72_v37 }
  0x5a   :  { %v76_v49 = vsel %vm75_vm0, %v72_v37, %v74_v48 }
  0x5b   :  { %v79_v50 = vsel %vm77_vm1, %v78_v45, %v76_v49 }
  0x5c   :  { %v80_v53 = vmul.f32 -0.007784894, %v79_v50  ;;  %v90_v54 = vmul.f32 0.007784696, %v79_v50 }
  0x5e   :  { %v81_v55 = vadd.f32 -0.32239646, %v80_v53  ;;  %v91_v56 = vadd.f32 0.32246712, %v90_v54 }
  0x60   :  { %v82_v59 = vmul.f32 %v81_v55, %v79_v50  ;;  %v92_v60 = vmul.f32 %v91_v56, %v79_v50 }
  0x62   :  { %v83_v61 = vadd.f32 -2.4007583, %v82_v59  ;;  %v93_v62 = vadd.f32 2.4451342, %v92_v60 }
  0x64   :  { %v84_v1 = vmul.f32 %v83_v61, %v79_v50  ;;  %v94_v2 = vmul.f32 %v93_v62, %v79_v50 }
  0x66   :  { %v85_v3 = vadd.f32 -2.5497324, %v84_v1  ;;  %v95_v4 = vadd.f32 3.7544086, %v94_v2 }
  0x68   :  { %v86_v7 = vmul.f32 %v85_v3, %v79_v50  ;;  %v96_v8 = vmul.f32 %v95_v4, %v79_v50 }
  0x6a   :  { %v87_v10 = vadd.f32 4.3746643, %v86_v7  ;;  %v97_v11 = vadd.f32 1.0, %v96_v8 }
  0x6c   :  { %v88_v13 = vmul.f32 %v87_v10, %v79_v50  ;;  %v105_v14 = vsel %vm177_vm4, %v97_v11, %v67_v6 }
  0x6d   :  { %129 = vrcp.f32 %v105_v14 }
  0x6e   :  { %v89_v15 = vadd.f32 2.938164, %v88_v13 }
  0x70   :  { %v99_v17 = vsub.f32 0.0, %v89_v15 }
  0x72   :  { %v100_v19 = vsel %vm98_vm5, %v89_v15, %v99_v17 }
  0x73   :  { %v104_v20 = vsel %vm177_vm4, %v100_v19, %v57_v18 }
  0x7a   :  { %v130_v21 = vpop.eup %129 }
  0x7b   :  { %v107_v22 = vmul.f32 %v130_v21, %v104_v20 }
  0x7d   :  { %108 = vst [vmem:[#allocation3] sm:$0xff] %v107_v22 }
  0x7e   :  { %142 = shalt.err (!%p139_p4)
}
  0x7f   :  { %118 = dma.vmem_to_hbm [thread:$0]  %s116_s11, 128, %s190_s1, [#allocation4]  }
  0x80   :  { %151 = dma.done.wait [#allocation4], 128  }
  0x81   :  { %152 = vsyncadd [#allocation4], 4294967168 }
  0x82   :  { %122 = vsyncpa [#allocation4], 1 }

</bundles_post_ra>
